<compile_context>
chip_gen: v7x
topology: tpu7x:2x2x1
jax: 0.10.0
libtpu: 0.0.40
codegen_flags: <defaults>
</compile_context>

<pallas_src>
import functools

import jax
import jax.numpy as jnp
from jax.experimental import pallas as pl
from jax.experimental.pallas import tpu as pltpu


# ------------------------------ helpers ------------------------------------ #
def _round_up(x, m):
    return ((x + m - 1) // m) * m


def _device_kind():
    try:
        return jax.devices()[0].device_kind.lower()
    except Exception:
        return ""


def _tpu_vmem_bytes():
    """Physical per-core VMEM, conservative for unknown chips."""
    kind = _device_kind()
    if "v2" in kind or "v3" in kind:
        return 16 << 20
    if "v4" in kind or "v5" in kind or "v6" in kind:
        return 128 << 20
    return 64 << 20  # v7x / unknown: be conservative


def _fused_vmem_estimate(n_pad, f_pad):
    """Conservative VMEM estimate for the fused kernel (assume 2 buffers/block)."""
    adj = 2 * n_pad * n_pad * 2          # A_hat, bf16
    x0 = 2 * n_pad * f_pad * 2           # X0, bf16
    out = 2 * n_pad * f_pad * 4          # resident output / activation, f32
    wb = 2 * (f_pad * f_pad * 2 + f_pad * 4)
    return adj + x0 + out + wb + (1 << 20)


def _pick_tm(n_pad, f_pad, vmem_phys):
    """Row tile for the tiled path: 256 on v5*, 512 on v6e/v7x, budget-checked."""
    kind = _device_kind()
    desired = 256 if "v5" in kind else 512
    budget = (vmem_phys * 3) // 4
    resident = 2 * n_pad * f_pad * 2          # XW (bf16), worst-case 2 buffers
    for cand in (desired, 256, 128):
        if cand > n_pad:
            continue
        need = (resident
                + 2 * cand * n_pad * 2        # adjacency row stream, bf16, 2 bufs
                + 2 * cand * f_pad * 4        # output tile, f32, 2 bufs
                + (1 << 20))
        if need <= budget:
            return cand
    return 128


# ------------------------- fused multi-layer kernel ------------------------ #
def _gcn_fused_kernel(adj_ref, x_ref, w_ref, b_ref, o_ref):
    """Grid axis = layer index.  adjacency / x / output blocks are resident
    (constant index_map); per-layer W/b slices are streamed.  The resident
    output block is also the activation carrier (no extra scratch)."""
    layer = pl.program_id(0)
    last = pl.num_programs(0) - 1

    @pl.when(layer == 0)
    def _():
        o_ref[...] = x_ref[...].astype(jnp.float32)   # seed activation with X0

    h_bf16 = o_ref[...].astype(jnp.bfloat16)
    # X @ W : computed exactly once per layer.
    xw = jnp.dot(h_bf16, w_ref[0], preferred_element_type=jnp.float32)
    # A_hat @ (X W) + b : bf16 MXU operands, f32 accumulation + f32 epilogue.
    out = jnp.dot(adj_ref[...], xw.astype(jnp.bfloat16),
                  preferred_element_type=jnp.float32)
    out = out + b_ref[0]

    # Exactly one store per layer: hidden layers carry ReLU'd activation in the
    # resident output block; the last layer writes the raw value, which is the
    # block that gets flushed to HBM at the end of the grid.
    @pl.when(layer < last)
    def _():
        o_ref[...] = jnp.maximum(out, 0.0).astype(o_ref.dtype)

    @pl.when(layer == last)
    def _():
        o_ref[...] = out.astype(o_ref.dtype)


def _gcn_forward_fused(adj_bf16, x_p, w_stack, b_stack, num_layers,
                       n_pad, f_pad, vmem_limit):
    return pl.pallas_call(
        _gcn_fused_kernel,
        out_shape=jax.ShapeDtypeStruct((n_pad, f_pad), jnp.float32),
        grid_spec=pltpu.PrefetchScalarGridSpec(
            num_scalar_prefetch=0,
            grid=(num_layers,),
            in_specs=[
                pl.BlockSpec((n_pad, n_pad), lambda l: (0, 0)),        # A_hat (bf16, resident)
                pl.BlockSpec((n_pad, f_pad), lambda l: (0, 0)),        # X0 (bf16, resident)
                pl.BlockSpec((1, f_pad, f_pad), lambda l: (l, 0, 0)),  # W[l] (bf16)
                pl.BlockSpec((1, 1, f_pad), lambda l: (l, 0, 0)),      # b[l] (f32)
            ],
            out_specs=pl.BlockSpec((n_pad, f_pad), lambda l: (0, 0)),
        ),
        compiler_params=pltpu.CompilerParams(
            # layers are sequentially dependent through the resident output
            dimension_semantics=("arbitrary",),
            vmem_limit_bytes=int(vmem_limit)),
    )(adj_bf16, x_p, w_stack, b_stack)


# ------------------------- tiled large-N path ------------------------------ #
def _xw_kernel(x_ref, w_ref, o_ref):
    o_ref[...] = jnp.dot(x_ref[...].astype(jnp.bfloat16), w_ref[...],
                         preferred_element_type=jnp.float32).astype(o_ref.dtype)


def _agg_kernel(adj_ref, xw_ref, b_ref, o_ref, *, apply_relu):
    out = jnp.dot(adj_ref[...], xw_ref[...], preferred_element_type=jnp.float32)
    out = out + b_ref[...]                        # f32 epilogue (v5e-friendly)
    if apply_relu:
        out = jnp.maximum(out, 0.0)
    o_ref[...] = out.astype(o_ref.dtype)


def _gcn_forward_tiled(adj_bf16, x_p, w_stack, b_stack, num_layers,
                       n_pad, f_pad, *, tm, vmem_limit):
    # TODO(synk): K-tile the adjacency contraction (grid=(rows, kcols)) for
    # n_pad >= ~16k so the (tm, n_pad) row stream stops growing with n_pad.
    x_cur = x_p                                   # bf16 activation in HBM
    for l in range(num_layers):
        w = w_stack[l]                            # (f_pad, f_pad) bf16
        b = b_stack[l]                            # (1, f_pad) f32
        last = (l == num_layers - 1)

        # 1) XW once per layer (lane-dense f_pad output, bf16).
        xw = pl.pallas_call(
            _xw_kernel,
            out_shape=jax.ShapeDtypeStruct((n_pad, f_pad), jnp.bfloat16),
            grid_spec=pltpu.PrefetchScalarGridSpec(
                num_scalar_prefetch=0,
                grid=(n_pad // tm,),
                in_specs=[pl.BlockSpec((tm, f_pad), lambda i: (i, 0)),
                          pl.BlockSpec((f_pad, f_pad), lambda i: (0, 0))],
                out_specs=pl.BlockSpec((tm, f_pad), lambda i: (i, 0)),
            ),
            compiler_params=pltpu.CompilerParams(
                dimension_semantics=("parallel",)),
        )(x_cur, w)

        # 2) A_hat @ XW + b (+ ReLU).  Adjacency row tiles streamed with the
        #    default double buffer (stream is HBM-bound, a 3rd buffer can't
        #    help); XW / b stay resident (constant index).  Intermediate
        #    activations are written back in bf16, only the last layer in f32.
        out_dtype = jnp.float32 if last else jnp.bfloat16
        x_cur = pl.pallas_call(
            functools.partial(_agg_kernel, apply_relu=not last),
            out_shape=jax.ShapeDtypeStruct((n_pad, f_pad), out_dtype),
            grid_spec=pltpu.PrefetchScalarGridSpec(
                num_scalar_prefetch=0,
                grid=(n_pad // tm,),
                in_specs=[
                    pl.BlockSpec((tm, n_pad), lambda i: (i, 0)),
                    pl.BlockSpec((n_pad, f_pad), lambda i: (0, 0)),
                    pl.BlockSpec((1, f_pad), lambda i: (0, 0)),
                ],
                out_specs=pl.BlockSpec((tm, f_pad), lambda i: (i, 0)),
            ),
            compiler_params=pltpu.CompilerParams(
                dimension_semantics=("parallel",),
                vmem_limit_bytes=int(vmem_limit)),
        )(adj_bf16, xw, b)
    return x_cur


# ------------------------------ wrapper ------------------------------------ #
def _prepare(params, x, adj_norm, n_pad, f_pad):
    """Zero-pad to (n_pad, f_pad) lane-dense layout; adjacency / X / W directly
    in bf16 (no f32 n_pad^2 temporary), bias stays f32."""
    n = adj_norm.shape[0]
    adj_bf16 = (jnp.zeros((n_pad, n_pad), jnp.bfloat16)
                .at[:n, :n].set(adj_norm.astype(jnp.bfloat16)))
    x_p = (jnp.zeros((n_pad, f_pad), jnp.bfloat16)
           .at[:n, :x.shape[1]].set(x.astype(jnp.bfloat16)))

    w_list, b_list = [], []
    for (w, b) in params:
        wp = (jnp.zeros((f_pad, f_pad), jnp.bfloat16)
              .at[:w.shape[0], :w.shape[1]].set(w.astype(jnp.bfloat16)))
        bp = jnp.zeros((1, f_pad), jnp.float32).at[:, :b.shape[1]].set(b)
        w_list.append(wp)
        b_list.append(bp)
    return adj_bf16, x_p, jnp.stack(w_list), jnp.stack(b_list)


def gcn_forward(params, x, adj_norm, *, force_tiled=False, tm=None):
    """GCN.forward: conv -> relu -> (dropout=identity in eval) ... -> conv."""
    n = adj_norm.shape[0]
    out_channels = params[-1][0].shape[1]
    num_layers = len(params)

    dims = [x.shape[1]] + [w.shape[1] for (w, _) in params]
    f_pad = _round_up(max(max(dims), 128), 128)
    n_pad128 = _round_up(max(n, 128), 128)

    vmem_phys = _tpu_vmem_bytes()
    fused_budget = (vmem_phys * 3) // 4
    vmem_limit = min((vmem_phys * 7) // 8, fused_budget + (16 << 20))
    use_fused = (not force_tiled) and (
        _fused_vmem_estimate(n_pad128, f_pad) <= fused_budget)

    if use_fused:
        n_pad = n_pad128
        adj_bf16, x_p, w_stack, b_stack = _prepare(params, x, adj_norm,
                                                   n_pad, f_pad)
        out_p = _gcn_forward_fused(adj_bf16, x_p, w_stack, b_stack,
                                   num_layers, n_pad, f_pad, vmem_limit)
    else:
        if tm is not None:
            tile = min(_round_up(tm, 128), n_pad128)
        else:
            tile = _pick_tm(n_pad128, f_pad, vmem_phys)
        tile = max(128, min(tile, n_pad128))
        n_pad = _round_up(n, tile)                 # tile always divides n_pad
        adj_bf16, x_p, w_stack, b_stack = _prepare(params, x, adj_norm,
                                                   n_pad, f_pad)
        out_p = _gcn_forward_tiled(adj_bf16, x_p, w_stack, b_stack,
                                   num_layers, n_pad, f_pad,
                                   tm=tile, vmem_limit=vmem_limit)
    return out_p[:n, :out_channels].astype(jnp.float32)


# ------------------------------ reference ---------------------------------- #
def gcn_forward_ref(params, x, adj_norm):
    """Pure-JAX reference mirroring the kernel's bf16-operand / f32-accum math."""
    adj_bf16 = adj_norm.astype(jnp.bfloat16)
    h = x
    num_layers = len(params)
    for i, (w, b) in enumerate(params):
        xw = jnp.dot(h.astype(jnp.bfloat16), w.astype(jnp.bfloat16),
                     preferred_element_type=jnp.float32).astype(jnp.bfloat16)
        h = jnp.dot(adj_bf16, xw, preferred_element_type=jnp.float32) + b
        if i < num_layers - 1:
            h = jnp.maximum(h, 0.0)
    return h


# --------------------------- inputs / params -------------------------------- #
def init_gcn_params(key, in_channels, hidden_channels, out_channels, num_layers):
    """Glorot-ish init with GCNConv parameter shapes."""
    sizes = []
    c = in_channels
    for _ in range(num_layers - 1):
        sizes.append((c, hidden_channels))
        c = hidden_channels
    sizes.append((c, out_channels))

    params = []
    for i, (fi, fo) in enumerate(sizes):
        kw, kb = jax.random.split(jax.random.fold_in(key, i))
        scale = jnp.sqrt(6.0 / (fi + fo))
        w = jax.random.uniform(kw, (fi, fo), jnp.float32, -scale, scale)
        b = 0.1 * jax.random.normal(kb, (1, fo), jnp.float32)
        params.append((w, b))
    return params


def make_normalized_adj(key, n, edge_prob=0.05):
    """Dense symmetric random graph, self-loops, GCN symmetric normalization."""
    a = (jax.random.uniform(key, (n, n)) < edge_prob).astype(jnp.float32)
    a = jnp.maximum(a, a.T)
    a = a * (1.0 - jnp.eye(n)) + jnp.eye(n)
    deg = a.sum(axis=1)
    d_inv_sqrt = jnp.where(deg > 0, 1.0 / jnp.sqrt(deg), 0.0)
    return (a * d_inv_sqrt[:, None]) * d_inv_sqrt[None, :]


# --------------------------------- main ------------------------------------ #
if __name__ == "__main__":
    key = jax.random.PRNGKey(0)
    k_adj, k_x, k_p, k_adj2, k_x2, k_p2 = jax.random.split(key, 6)

    fwd = jax.jit(gcn_forward, static_argnames=("force_tiled", "tm"))

    # Config 1: small graph (N=128) -> fused single-pallas_call path (n_pad=128).
    N = 128
    in_c, hid_c, out_c, L = 32, 32, 32, 3
    dropout = 0.5  # identity in eval mode
    x = jax.random.normal(k_x, (N, in_c), jnp.float32)
    adj = make_normalized_adj(k_adj, N)
    params = init_gcn_params(k_p, in_c, hid_c, out_c, L)

    out = jax.block_until_ready(fwd(params, x, adj))
    ref = gcn_forward_ref(params, x, adj)
    assert out.shape == (N, out_c)
    err = float(jnp.max(jnp.abs(out - ref)))
    assert jnp.allclose(out, ref, atol=1e-2, rtol=1e-2), f"fused max err {err}"

    # Config 2: larger graph (N=512) -> tiled (XW kernel + streamed A_hat) path.
    N2 = 512
    x2 = jax.random.normal(k_x2, (N2, in_c), jnp.float32)
    adj2 = make_normalized_adj(k_adj2, N2)
    params2 = init_gcn_params(k_p2, in_c, hid_c, out_c, L)

    out2 = jax.block_until_ready(fwd(params2, x2, adj2, force_tiled=True))
    ref2 = gcn_forward_ref(params2, x2, adj2)
    assert out2.shape == (N2, out_c)
    err2 = float(jnp.max(jnp.abs(out2 - ref2)))
    assert jnp.allclose(out2, ref2, atol=1e-2, rtol=1e-2), f"tiled max err {err2}"

    print("KERNEL_OK")
</pallas_src>

<mosaic_0001>
module attributes {stable_mosaic.version = 11 : i64} {
  func.func @_gcn_fused_kernel(%arg0: i32, %arg1: memref<128x128xbf16, #tpu.memory_space<vmem>>, %arg2: memref<128x128xbf16, #tpu.memory_space<vmem>>, %arg3: memref<1x128x128xbf16, #tpu.memory_space<vmem>>, %arg4: memref<1x1x128xf32, #tpu.memory_space<vmem>>, %arg5: memref<128x128xf32, #tpu.memory_space<vmem>>) attributes {dimension_semantics = [#tpu.dimension_semantics<arbitrary>], iteration_bounds = array<i64: 3>, scalar_prefetch = 0 : i64, scratch_operands = 0 : i64, tpu.core_type = #tpu.core_type<tc>, window_params = [{pipeline_mode = #tpu.pipeline_mode<synchronous>, transform_indices = @transform_0, window_bounds = array<i64: 128, 128>}, {pipeline_mode = #tpu.pipeline_mode<synchronous>, transform_indices = @transform_1, window_bounds = array<i64: 128, 128>}, {transform_indices = @transform_2, window_bounds = array<i64: 1, 128, 128>}, {transform_indices = @transform_3, window_bounds = array<i64: 1, 1, 128>}, {pipeline_mode = #tpu.pipeline_mode<synchronous>, transform_indices = @transform_4, window_bounds = array<i64: 128, 128>}]} {
    %c0_i32 = arith.constant 0 : i32
    %0 = arith.cmpi eq, %arg0, %c0_i32 : i32
    %1 = arith.extui %0 : i1 to i32
    %c0_i32_0 = arith.constant 0 : i32
    %2 = arith.cmpi ne, %1, %c0_i32_0 : i32
    scf.if %2 {
      %c0_14 = arith.constant 0 : index
      %c0_15 = arith.constant 0 : index
      %21 = vector.load %arg2[%c0_14, %c0_15] : memref<128x128xbf16, #tpu.memory_space<vmem>>, vector<128x128xbf16>
      %22 = arith.extf %21 : vector<128x128xbf16> to vector<128x128xf32>
      %c0_16 = arith.constant 0 : index
      %c0_17 = arith.constant 0 : index
      %23 = vector.load %arg5[%c0_16, %c0_17] : memref<128x128xf32, #tpu.memory_space<vmem>>, vector<128x128xf32>
      tpu.vector_store %arg5[%c0_16, %c0_17], %22 {strides = array<i32>} : memref<128x128xf32, #tpu.memory_space<vmem>>, vector<128x128xf32>,
    } else {
    }
    %c0 = arith.constant 0 : index
    %c0_1 = arith.constant 0 : index
    %3 = vector.load %arg5[%c0, %c0_1] : memref<128x128xf32, #tpu.memory_space<vmem>>, vector<128x128xf32>
    %4 = arith.truncf %3 : vector<128x128xf32> to vector<128x128xbf16>
    %c0_2 = arith.constant 0 : index
    %c0_3 = arith.constant 0 : index
    %c0_4 = arith.constant 0 : index
    %5 = vector.load %arg3[%c0_2, %c0_3, %c0_4] : memref<1x128x128xbf16, #tpu.memory_space<vmem>>, vector<1x128x128xbf16>
    %6 = vector.shape_cast %5 : vector<1x128x128xbf16> to vector<128x128xbf16>
    %cst = arith.constant dense<0.000000e+00> : vector<128x128xf32>
    %7 = tpu.matmul %4, %6, %cst {dimension_numbers = #tpu.dot_dimension_numbers<[1], [0], [0], [1], [0, 0, 1, 1], [], []>} : vector<128x128xbf16>, vector<128x128xbf16>, vector<128x128xf32> -> vector<128x128xf32>
    %c0_5 = arith.constant 0 : index
    %c0_6 = arith.constant 0 : index
    %8 = vector.load %arg1[%c0_5, %c0_6] : memref<128x128xbf16, #tpu.memory_space<vmem>>, vector<128x128xbf16>
    %9 = arith.truncf %7 : vector<128x128xf32> to vector<128x128xbf16>
    %cst_7 = arith.constant dense<0.000000e+00> : vector<128x128xf32>
    %10 = tpu.matmul %8, %9, %cst_7 {dimension_numbers = #tpu.dot_dimension_numbers<[1], [0], [0], [1], [0, 0, 1, 1], [], []>} : vector<128x128xbf16>, vector<128x128xbf16>, vector<128x128xf32> -> vector<128x128xf32>
    %c0_8 = arith.constant 0 : index
    %c0_9 = arith.constant 0 : index
    %c0_10 = arith.constant 0 : index
    %11 = vector.load %arg4[%c0_8, %c0_9, %c0_10] : memref<1x1x128xf32, #tpu.memory_space<vmem>>, vector<1x1x128xf32>
    %12 = vector.shape_cast %11 : vector<1x1x128xf32> to vector<1x128xf32>
    %13 = vector.broadcast %12 : vector<1x128xf32> to vector<128x128xf32>
    %14 = arith.addf %10, %13 : vector<128x128xf32>
    %c2_i32 = arith.constant 2 : i32
    %15 = arith.cmpi slt, %arg0, %c2_i32 : i32
    %16 = arith.extui %15 : i1 to i32
    %c0_i32_11 = arith.constant 0 : i32
    %17 = arith.cmpi ne, %16, %c0_i32_11 : i32
    scf.if %17 {
      %cst_14 = arith.constant 0.000000e+00 : f32
      %21 = vector.broadcast %cst_14 : f32 to vector<128x128xf32>
      %22 = arith.maximumf %14, %21 : vector<128x128xf32>
      %c0_15 = arith.constant 0 : index
      %c0_16 = arith.constant 0 : index
      %23 = vector.load %arg5[%c0_15, %c0_16] : memref<128x128xf32, #tpu.memory_space<vmem>>, vector<128x128xf32>
      tpu.vector_store %arg5[%c0_15, %c0_16], %22 {strides = array<i32>} : memref<128x128xf32, #tpu.memory_space<vmem>>, vector<128x128xf32>,
    } else {
    }
    %c2_i32_12 = arith.constant 2 : i32
    %18 = arith.cmpi eq, %arg0, %c2_i32_12 : i32
    %19 = arith.extui %18 : i1 to i32
    %c0_i32_13 = arith.constant 0 : i32
    %20 = arith.cmpi ne, %19, %c0_i32_13 : i32
    scf.if %20 {
      %c0_14 = arith.constant 0 : index
      %c0_15 = arith.constant 0 : index
      %21 = vector.load %arg5[%c0_14, %c0_15] : memref<128x128xf32, #tpu.memory_space<vmem>>, vector<128x128xf32>
      tpu.vector_store %arg5[%c0_14, %c0_15], %14 {strides = array<i32>} : memref<128x128xf32, #tpu.memory_space<vmem>>, vector<128x128xf32>,
    } else {
    }
    return
  }
  func.func @transform_0(%arg0: i32) -> (i32, i32) {
    %c0_i32 = arith.constant 0 : i32
    %c0_i32_0 = arith.constant 0 : i32
    %c0_i32_1 = arith.constant 0 : i32
    return %c0_i32, %c0_i32_0 : i32, i32
  }
  func.func @transform_1(%arg0: i32) -> (i32, i32) {
    %c0_i32 = arith.constant 0 : i32
    %c0_i32_0 = arith.constant 0 : i32
    %c0_i32_1 = arith.constant 0 : i32
    return %c0_i32, %c0_i32_0 : i32, i32
  }
  func.func @transform_2(%arg0: i32) -> (i32, i32, i32) {
    %c0_i32 = arith.constant 0 : i32
    %c0_i32_0 = arith.constant 0 : i32
    %c0_i32_1 = arith.constant 0 : i32
    return %arg0, %c0_i32, %c0_i32_0 : i32, i32, i32
  }
  func.func @transform_3(%arg0: i32) -> (i32, i32, i32) {
    %c0_i32 = arith.constant 0 : i32
    %c0_i32_0 = arith.constant 0 : i32
    %c0_i32_1 = arith.constant 0 : i32
    return %arg0, %c0_i32, %c0_i32_0 : i32, i32, i32
  }
  func.func @transform_4(%arg0: i32) -> (i32, i32) {
    %c0_i32 = arith.constant 0 : i32
    %c0_i32_0 = arith.constant 0 : i32
    %c0_i32_1 = arith.constant 0 : i32
    return %c0_i32, %c0_i32_0 : i32, i32
  }
}

</mosaic_0001>

<bundles_post_ra>
// kernel: gcn_forward.1
= control target key start
LH: loop header
LB: loop body
LE: loop exit
PB: predicated region body
PF: predicated region fallthrough
CT: control target
= control target key end

     0   :  { %s925_s15 = smov 0   ;;  %s1224_s0 = inlined_call_operand.vmem [shape: bf16[128,128], index: 0, kind: input, shape index: {}]   ;;  %s1225_s1 = inlined_call_operand.vmem [shape: bf16[128,128], index: 1, kind: input, shape index: {}]   ;;  %s1226_s2 = inlined_call_operand.vmem [shape: bf16[3,128,128], index: 2, kind: input, shape index: {}]   ;;  %s1227_s3 = inlined_call_operand.vmem [shape: f32[3,1,128], index: 3, kind: input, shape index: {}]   ;;  %s1228_s4 = inlined_call_operand.vmem [shape: f32[128,128], index: 4, kind: output, shape index: {}]  }
   0x1 LB: > { %s931_s16 = sadd.s32 4294967295, %s898_s15   ;;  %p707_p0 = scmp.ge.s32.totalorder %s898_s15, 1  ;;  %s898_s15 = sphi %s925_s15, %s14_s15  }
   0x2   : > { %p165_p1 = scmp.lt.s32.totalorder %s898_s15, 4 }
   0x4   : > { %p166_p2 = pnand %p707_p0, %p165_p1 }
   0x5   : > { %p189_p3 = scmp.lt.s32.totalorder (!%p166_p2), %s931_s16, 2  ;;  %p710_p4 = scmp.ne.s32.totalorder (!%p166_p2), %s931_s16, 0 }
   0x6   : > { %169 = sbr.rel (%p166_p2) target bundleno = 560 (0x230), region = 36 }
   0xd   : > { %s937_s17 = scalar_select %p189_p3, %s931_s16, 2 }
   0xe   : > { %201 = sbr.rel (%p710_p4) target bundleno = 25 (0x19), region = 40  ;;  %v734_v0 = vld [vmem:[%s1225_s1] sm:$0xff] (!%p710_p4)   ;;  %v765_v1 = vld [vmem:[%s1225_s1 + $0x8] sm:$0xff] (!%p710_p4)   ;;  %v766_v2 = vld [vmem:[%s1225_s1 + $0x10] sm:$0xff] (!%p710_p4)  }
   0xf   : > { %s732_s18 = sshll.u32 %s937_s17, 6  ;;  %s196_s21 = scalar_lea.vmem %s1227_s3, %s937_s17  ;;  %v735_v3 = vunpack.c.l.bf16 (!%p710_p4), %v734_v0  ;;  %v736_v4 = vunpack.c.h.bf16 (!%p710_p4), %v734_v0  ;;  %v739_v5 = vunpack.c.l.bf16 (!%p710_p4), %v765_v1  ;;  %v740_v6 = vunpack.c.h.bf16 (!%p710_p4), %v765_v1  ;;  %v767_v7 = vld [vmem:[%s1225_s1 + $0x18] sm:$0xff] (!%p710_p4)   ;;  %v768_v8 = vld [vmem:[%s1225_s1 + $0x20] sm:$0xff] (!%p710_p4)   ;;  %v769_v9 = vld [vmem:[%s1225_s1 + $0x28] sm:$0xff] (!%p710_p4)  }
  0x10   : > { %s947_s24 = scalar_lea.vmem %s1226_s2, %s732_s18  ;;  %v743_v10 = vunpack.c.l.bf16 (!%p710_p4), %v766_v2  ;;  %v744_v11 = vunpack.c.h.bf16 (!%p710_p4), %v766_v2  ;;  %v747_v12 = vunpack.c.l.bf16 (!%p710_p4), %v767_v7  ;;  %v748_v13 = vunpack.c.h.bf16 (!%p710_p4), %v767_v7  ;;  %v770_v14 = vld [vmem:[%s1225_s1 + $0x30] sm:$0xff] (!%p710_p4)   ;;  %v771_v15 = vld [vmem:[%s1225_s1 + $0x38] sm:$0xff] (!%p710_p4)  }
  0x11   : > { %234 = vst [vmem:[%s1228_s4] sm:$0xff] (!%p710_p4), %v735_v3  ;;  %235 = vst [vmem:[%s1228_s4 + $0x8] sm:$0xff] (!%p710_p4), %v736_v4  ;;  %v751_v16 = vunpack.c.l.bf16 (!%p710_p4), %v768_v8  ;;  %v752_v17 = vunpack.c.h.bf16 (!%p710_p4), %v768_v8  ;;  %v755_v18 = vunpack.c.l.bf16 (!%p710_p4), %v769_v9  ;;  %v756_v19 = vunpack.c.h.bf16 (!%p710_p4), %v769_v9 }
  0x12   : > { %236 = vst [vmem:[%s1228_s4 + $0x10] sm:$0xff] (!%p710_p4), %v739_v5  ;;  %237 = vst [vmem:[%s1228_s4 + $0x18] sm:$0xff] (!%p710_p4), %v740_v6  ;;  %v759_v20 = vunpack.c.l.bf16 (!%p710_p4), %v770_v14  ;;  %v760_v21 = vunpack.c.h.bf16 (!%p710_p4), %v770_v14  ;;  %v763_v22 = vunpack.c.l.bf16 (!%p710_p4), %v771_v15  ;;  %v764_v23 = vunpack.c.h.bf16 (!%p710_p4), %v771_v15 }
  0x13   : > { %238 = vst [vmem:[%s1228_s4 + $0x20] sm:$0xff] (!%p710_p4), %v743_v10  ;;  %239 = vst [vmem:[%s1228_s4 + $0x28] sm:$0xff] (!%p710_p4), %v744_v11 }
  0x14   : > { %240 = vst [vmem:[%s1228_s4 + $0x30] sm:$0xff] (!%p710_p4), %v747_v12  ;;  %241 = vst [vmem:[%s1228_s4 + $0x38] sm:$0xff] (!%p710_p4), %v748_v13 }
  0x15   : > { %242 = vst [vmem:[%s1228_s4 + $0x40] sm:$0xff] %v751_v16  ;;  %243 = vst [vmem:[%s1228_s4 + $0x48] sm:$0xff] %v752_v17 }
  0x16   : > { %244 = vst [vmem:[%s1228_s4 + $0x50] sm:$0xff] %v755_v18  ;;  %245 = vst [vmem:[%s1228_s4 + $0x58] sm:$0xff] %v756_v19 }
  0x17   : > { %246 = vst [vmem:[%s1228_s4 + $0x60] sm:$0xff] %v759_v20  ;;  %247 = vst [vmem:[%s1228_s4 + $0x68] sm:$0xff] %v760_v21 }
  0x18   : > { %248 = vst [vmem:[%s1228_s4 + $0x70] sm:$0xff] %v763_v22  ;;  %249 = vst [vmem:[%s1228_s4 + $0x78] sm:$0xff] %v764_v23 }
  0x19 PF: > { %v876_v24 = vld [vmem:[%s947_s24] sm:$0xff]   ;;  %v877_v25 = vld [vmem:[%s947_s24 + $0x8] sm:$0xff]   ;;  %v878_v26 = vld [vmem:[%s947_s24 + $0x10] sm:$0xff]   ;;  %p728_p5 = scmp.ge.s32.totalorder %s931_s16, 2 }
  0x1a   : > { %804 = vmatprep.subr.bf16.mxu0 %v876_v24  ;;  %v879_v27 = vld [vmem:[%s947_s24 + $0x18] sm:$0xff]   ;;  %v880_v31 = vld [vmem:[%s947_s24 + $0x20] sm:$0xff]   ;;  %v881_v32 = vld [vmem:[%s947_s24 + $0x28] sm:$0xff]  }
  0x1b   : > { %805 = vmatpush3.bf16.msra.mxu0 %v876_v24  ;;  %v882_v33 = vld [vmem:[%s947_s24 + $0x30] sm:$0xff]   ;;  %v883_v34 = vld [vmem:[%s947_s24 + $0x38] sm:$0xff]   ;;  %v884_v56 = vld [vmem:[%s1224_s0] sm:$0xff]  }
  0x1c   : > { %806 = vmatprep.subr.bf16.mxu0 %v877_v25  ;;  %v250_v28 = vld [vmem:[%s1228_s4] sm:$0xff]  ;;  %v251_v29 = vld [vmem:[%s1228_s4 + $0x8] sm:$0xff]  ;;  %852 = vmatprep.mubr.bf16.mxu1 %v884_v56  ;;  %v886_v18 = vld [vmem:[%s1224_s0 + $0x10] sm:$0xff]  }
  0x1d   : > { %v266_v30 = vpack.c.bf16 %v251_v29, %v250_v28  ;;  %v252_v35 = vld [vmem:[%s1228_s4 + $0x10] sm:$0xff]  ;;  %v253_v36 = vld [vmem:[%s1228_s4 + $0x18] sm:$0xff]  ;;  %v885_v17 = vld [vmem:[%s1224_s0 + $0x8] sm:$0xff]  }
  0x1e   : > { %v254_v37 = vld [vmem:[%s1228_s4 + $0x20] sm:$0xff]  ;;  %v255_v38 = vld [vmem:[%s1228_s4 + $0x28] sm:$0xff]  ;;  %v267_v39 = vpack.c.bf16 %v253_v36, %v252_v35  ;;  %v260_v47 = vld [vmem:[%s1228_s4 + $0x50] sm:$0xff] }
  0x1f   : > { %807 = vmatpush3.bf16.msra.mxu0 %v877_v25  ;;  %820 = vmatprep.mubr.bf16.mxu0 %v266_v30  ;;  %v268_v40 = vpack.c.bf16 %v255_v38, %v254_v37  ;;  %v256_v41 = vld [vmem:[%s1228_s4 + $0x30] sm:$0xff]  ;;  %v257_v42 = vld [vmem:[%s1228_s4 + $0x38] sm:$0xff]  ;;  %v262_v49 = vld [vmem:[%s1228_s4 + $0x60] sm:$0xff] }
  0x20   : > { %808 = vmatprep.subr.bf16.mxu0 %v878_v26  ;;  %v258_v43 = vld [vmem:[%s1228_s4 + $0x40] sm:$0xff]  ;;  %v259_v44 = vld [vmem:[%s1228_s4 + $0x48] sm:$0xff]  ;;  %v269_v45 = vpack.c.bf16 %v257_v42, %v256_v41  ;;  %v261_v48 = vld [vmem:[%s1228_s4 + $0x58] sm:$0xff] }
  0x21   : > { %v270_v46 = vpack.c.bf16 %v259_v44, %v258_v43  ;;  %v263_v50 = vld [vmem:[%s1228_s4 + $0x68] sm:$0xff]  ;;  %v271_v51 = vpack.c.bf16 %v261_v48, %v260_v47  ;;  %v264_v53 = vld [vmem:[%s1228_s4 + $0x70] sm:$0xff]  ;;  %v265_v54 = vld [vmem:[%s1228_s4 + $0x78] sm:$0xff] }
  0x22   : > { %v272_v52 = vpack.c.bf16 %v263_v50, %v262_v49  ;;  %v273_v55 = vpack.c.bf16 %v265_v54, %v264_v53  ;;  %v887_v19 = vld [vmem:[%s1224_s0 + $0x18] sm:$0xff]   ;;  %v888_v20 = vld [vmem:[%s1224_s0 + $0x20] sm:$0xff]   ;;  %v889_v21 = vld [vmem:[%s1224_s0 + $0x28] sm:$0xff]  }
  0x23   : > { %809 = vmatpush3.bf16.msra.mxu0 %v878_v26  ;;  %v890_v22 = vld [vmem:[%s1224_s0 + $0x30] sm:$0xff]   ;;  %v891_v23 = vld [vmem:[%s1224_s0 + $0x38] sm:$0xff]   ;;  %v719_v24 = vld [vmem:[%s196_s21] ss:$0 sm:$0xff] }
  0x24   : > { %810 = vmatprep.subr.bf16.mxu0 %v879_v27 }
  0x27   : > { %811 = vmatpush3.bf16.msra.mxu0 %v879_v27 }
  0x28   : > { %812 = vmatprep.subr.bf16.mxu0 %v880_v31 }
  0x2b   : > { %813 = vmatpush3.bf16.msra.mxu0 %v880_v31 }
  0x2c   : > { %814 = vmatprep.subr.bf16.mxu0 %v881_v32 }
  0x2f   : > { %815 = vmatpush3.bf16.msra.mxu0 %v881_v32 }
  0x30   : > { %816 = vmatprep.subr.bf16.mxu0 %v882_v33 }
  0x33   : > { %817 = vmatpush3.bf16.msra.mxu0 %v882_v33 }
  0x34   : > { %818 = vmatprep.subr.bf16.mxu0 %v883_v34 }
  0x37   : > { %819 = vmatpush3.bf16.msra.mxu0 %v883_v34 }
  0x3a   : > { %821 = vmatmul.mubr.bf16.vlgmr.msra.gmra.mrb[0].mxu0 %v267_v39 }
  0x3b   : > { %824 = vmatprep.mubr.bf16.mxu0 %v268_v40 }
  0x42   : > { %825 = vmatmul.mubr.bf16.gmra.mrb[4].mxu0 %v269_v45 }
  0x43   : > { %828 = vmatprep.mubr.bf16.mxu0 %v270_v46 }
  0x4a   : > { %829 = vmatmul.mubr.bf16.gmra.mrb[8].mxu0 %v271_v51 }
  0x4b   : > { %832 = vmatprep.mubr.bf16.mxu0 %v272_v52 }
  0x52   : > { %833 = vmatmul.mubr.bf16.gmra.mrb[12].mxu0 %v273_v55 }
 0x10d   : > { %v822_v57 = vpop.f32.mrb[0].mxu0 }
 0x10e   : > { %v372_v58 = vpop.f32.mrb[1].mxu0 }
 0x10f   : > { %v823_v59 = vpop.f32.mrb[2].mxu0 }
 0x110   : > { %v452_v60 = vpack.c.bf16 %v823_v59, %v822_v57  ;;  %v375_v61 = vpop.f32.mrb[3].mxu0 }
 0x111   : > { %v451_v62 = vpack.c.bf16 %v375_v61, %v372_v58 }
 0x113   : > { %836 = vmatprep.subr.bf16.mxu1 %v451_v62 }
 0x114   : > { %837 = vmatpush3.bf16.msra.mxu1 %v451_v62 }
 0x115   : > { %v826_v63 = vpop.f32.mrb[4].mxu0  ;;  %838 = vmatprep.subr.bf16.mxu1 %v452_v60 }
 0x116   : > { %v388_v0 = vpop.f32.mrb[5].mxu0 }
 0x117   : > { %v827_v1 = vpop.f32.mrb[6].mxu0 }
 0x118   : > { %v454_v2 = vpack.c.bf16 %v827_v1, %v826_v63  ;;  %v391_v3 = vpop.f32.mrb[7].mxu0  ;;  %839 = vmatpush3.bf16.msra.mxu1 %v452_v60 }
 0x119   : > { %v453_v4 = vpack.c.bf16 %v391_v3, %v388_v0 }
 0x11b   : > { %840 = vmatprep.subr.bf16.mxu1 %v453_v4 }
 0x11c   : > { %841 = vmatpush3.bf16.msra.mxu1 %v453_v4 }
 0x11d   : > { %v830_v5 = vpop.f32.mrb[8].mxu0  ;;  %842 = vmatprep.subr.bf16.mxu1 %v454_v2 }
 0x11e   : > { %v404_v6 = vpop.f32.mrb[9].mxu0 }
 0x11f   : > { %v831_v7 = vpop.f32.mrb[10].mxu0 }
 0x120   : > { %v456_v8 = vpack.c.bf16 %v831_v7, %v830_v5  ;;  %v407_v9 = vpop.f32.mrb[11].mxu0  ;;  %843 = vmatpush3.bf16.msra.mxu1 %v454_v2 }
 0x121   : > { %v455_v10 = vpack.c.bf16 %v407_v9, %v404_v6 }
 0x123   : > { %844 = vmatprep.subr.bf16.mxu1 %v455_v10 }
 0x124   : > { %845 = vmatpush3.bf16.msra.mxu1 %v455_v10 }
 0x125   : > { %v834_v11 = vpop.f32.mrb[12].mxu0  ;;  %846 = vmatprep.subr.bf16.mxu1 %v456_v8 }
 0x126   : > { %v420_v12 = vpop.f32.mrb[13].mxu0 }
 0x127   : > { %v835_v13 = vpop.f32.mrb[14].mxu0 }
 0x128   : > { %v458_v14 = vpack.c.bf16 %v835_v13, %v834_v11  ;;  %v423_v15 = vpop.f32.mrb[15].mxu0  ;;  %847 = vmatpush3.bf16.msra.mxu1 %v456_v8 }
 0x129   : > { %v457_v16 = vpack.c.bf16 %v423_v15, %v420_v12 }
 0x12b   : > { %848 = vmatprep.subr.bf16.mxu1 %v457_v16 }
 0x12c   : > { %849 = vmatpush3.bf16.msra.mxu1 %v457_v16 }
 0x12d   : > { %850 = vmatprep.subr.bf16.mxu1 %v458_v14 }
 0x130   : > { %851 = vmatpush3.bf16.msra.mxu1 %v458_v14 }
 0x133   : > { %853 = vmatmul.mubr.bf16.vlgmr.msra.gmra.mrb[0].mxu1 %v885_v17 }
 0x134   : > { %856 = vmatprep.mubr.bf16.mxu1 %v886_v18 }
 0x13b   : > { %857 = vmatmul.mubr.bf16.gmra.mrb[4].mxu1 %v887_v19 }
 0x13c   : > { %860 = vmatprep.mubr.bf16.mxu1 %v888_v20 }
 0x143   : > { %861 = vmatmul.mubr.bf16.gmra.mrb[8].mxu1 %v889_v21 }
 0x144   : > { %864 = vmatprep.mubr.bf16.mxu1 %v890_v22 }
 0x14b   : > { %865 = vmatmul.mubr.bf16.gmra.mrb[12].mxu1 %v891_v23 }
 0x206   : > { %v854_v25 = vpop.f32.mrb[0].mxu1 }
 0x207   : > { %v1107_v26 = vadd.f32 %v854_v25, %v719_v24  ;;  %v548_v27 = vpop.f32.mrb[1].mxu1 }
 0x208   : > { %v1109_v28 = vadd.f32 %v719_v24, %v548_v27  ;;  %v855_v29 = vpop.f32.mrb[2].mxu1 }
 0x209   : > { %v1111_v30 = vadd.f32 %v855_v29, %v719_v24  ;;  %v551_v31 = vpop.f32.mrb[3].mxu1  ;;  %v617_v59 = vmax.f32 (!%p728_p5), %v1107_v26, 0.0 }
 0x20a   : > { %v552_v32 = vadd.f32 %v719_v24, %v551_v31  ;;  %v615_v57 = vmax.f32 (!%p728_p5), %v1109_v28, 0.0 }
 0x20b   : > { %v618_v60 = vmax.f32 (!%p728_p5), %v1111_v30, 0.0  ;;  %633 = vst [vmem:[%s1228_s4 + $0x10] sm:$0xff] (!%p728_p5), %v617_v59 }
 0x20c   : > { %v616_v58 = vmax.f32 (!%p728_p5), %v552_v32, 0.0  ;;  %631 = vst [vmem:[%s1228_s4] sm:$0xff] (!%p728_p5), %v615_v57 }
 0x20d   : > { %634 = vst [vmem:[%s1228_s4 + $0x18] sm:$0xff] (!%p728_p5), %v618_v60 }
 0x20e   : > { %v858_v33 = vpop.f32.mrb[4].mxu1  ;;  %632 = vst [vmem:[%s1228_s4 + $0x8] sm:$0xff] (!%p728_p5), %v616_v58 }
 0x20f   : > { %v1113_v34 = vadd.f32 %v858_v33, %v719_v24  ;;  %v564_v35 = vpop.f32.mrb[5].mxu1 }
 0x210   : > { %v565_v36 = vadd.f32 %v719_v24, %v564_v35  ;;  %v859_v37 = vpop.f32.mrb[6].mxu1 }
 0x211   : > { %v576_v38 = vadd.f32 %v859_v37, %v719_v24  ;;  %v567_v39 = vpop.f32.mrb[7].mxu1  ;;  %v621_v63 = vmax.f32 (!%p728_p5), %v1113_v34, 0.0 }
 0x212   : > { %v568_v40 = vadd.f32 %v719_v24, %v567_v39  ;;  %v619_v61 = vmax.f32 (!%p728_p5), %v565_v36, 0.0 }
 0x213   : > { %v622_v0 = vmax.f32 (!%p728_p5), %v576_v38, 0.0  ;;  %637 = vst [vmem:[%s1228_s4 + $0x30] sm:$0xff] (!%p728_p5), %v621_v63 }
 0x214   : > { %v620_v62 = vmax.f32 (!%p728_p5), %v568_v40, 0.0  ;;  %635 = vst [vmem:[%s1228_s4 + $0x20] sm:$0xff] (!%p728_p5), %v619_v61 }
 0x215   : > { %638 = vst [vmem:[%s1228_s4 + $0x38] sm:$0xff] (!%p728_p5), %v622_v0 }
 0x216   : > { %v862_v41 = vpop.f32.mrb[8].mxu1  ;;  %636 = vst [vmem:[%s1228_s4 + $0x28] sm:$0xff] (!%p728_p5), %v620_v62 }
 0x217   : > { %v589_v42 = vadd.f32 %v862_v41, %v719_v24  ;;  %v580_v43 = vpop.f32.mrb[9].mxu1 }
 0x218   : > { %v581_v44 = vadd.f32 %v719_v24, %v580_v43  ;;  %v863_v45 = vpop.f32.mrb[10].mxu1 }
 0x219   : > { %v592_v46 = vadd.f32 %v863_v45, %v719_v24  ;;  %v583_v47 = vpop.f32.mrb[11].mxu1  ;;  %v625_v3 = vmax.f32 (!%p728_p5), %v589_v42, 0.0 }
 0x21a   : > { %v584_v48 = vadd.f32 %v719_v24, %v583_v47  ;;  %v623_v1 = vmax.f32 (!%p728_p5), %v581_v44, 0.0 }
 0x21b   : > { %v626_v4 = vmax.f32 (!%p728_p5), %v592_v46, 0.0  ;;  %641 = vst [vmem:[%s1228_s4 + $0x50] sm:$0xff] (!%p728_p5), %v625_v3 }
 0x21c   : > { %614 = sbr.rel (%p728_p5) target bundleno = 551 (0x227), region = 44  ;;  %v624_v2 = vmax.f32 (!%p728_p5), %v584_v48, 0.0  ;;  %639 = vst [vmem:[%s1228_s4 + $0x40] sm:$0xff] (!%p728_p5), %v623_v1 }
 0x21d   : > { %642 = vst [vmem:[%s1228_s4 + $0x58] sm:$0xff] (!%p728_p5), %v626_v4 }
 0x21e   : > { %v866_v49 = vpop.f32.mrb[12].mxu1  ;;  %640 = vst [vmem:[%s1228_s4 + $0x48] sm:$0xff] (!%p728_p5), %v624_v2 }
 0x21f   : > { %v605_v50 = vadd.f32 %v866_v49, %v719_v24  ;;  %v596_v51 = vpop.f32.mrb[13].mxu1 }
 0x220   : > { %v597_v52 = vadd.f32 %v719_v24, %v596_v51  ;;  %v867_v53 = vpop.f32.mrb[14].mxu1 }
 0x221   : > { %v608_v54 = vadd.f32 %v867_v53, %v719_v24  ;;  %v599_v55 = vpop.f32.mrb[15].mxu1  ;;  %v629_v7 = vmax.f32 (!%p728_p5), %v605_v50, 0.0 }
 0x222   : > { %v600_v56 = vadd.f32 %v719_v24, %v599_v55  ;;  %v627_v5 = vmax.f32 (!%p728_p5), %v597_v52, 0.0 }
 0x223   : > { %v630_v8 = vmax.f32 %v608_v54, 0.0  ;;  %645 = vst [vmem:[%s1228_s4 + $0x70] sm:$0xff] %v629_v7 }
 0x224   : > { %v628_v6 = vmax.f32 %v600_v56, 0.0  ;;  %643 = vst [vmem:[%s1228_s4 + $0x60] sm:$0xff] %v627_v5 }
 0x225   : > { %646 = vst [vmem:[%s1228_s4 + $0x78] sm:$0xff] %v630_v8 }
 0x226   : > { %644 = vst [vmem:[%s1228_s4 + $0x68] sm:$0xff] %v628_v6 }
 0x227 PF: > { %p729_p6 = scmp.ne.s32.totalorder %s931_s16, 2 }
 0x228   : > { %651 = vst [vmem:[%s1228_s4] sm:$0xff] (!%p729_p6), %v1109_v28  ;;  %652 = vst [vmem:[%s1228_s4 + $0x8] sm:$0xff] (!%p729_p6), %v552_v32 }
 0x229   : > { %650 = sbr.rel (%p729_p6) target bundleno = 560 (0x230), region = 48  ;;  %653 = vst [vmem:[%s1228_s4 + $0x10] sm:$0xff] (!%p729_p6), %v1107_v26  ;;  %654 = vst [vmem:[%s1228_s4 + $0x18] sm:$0xff] (!%p729_p6), %v1111_v30 }
 0x22a   : > { %655 = vst [vmem:[%s1228_s4 + $0x20] sm:$0xff] (!%p729_p6), %v565_v36  ;;  %656 = vst [vmem:[%s1228_s4 + $0x28] sm:$0xff] (!%p729_p6), %v568_v40 }
 0x22b   : > { %657 = vst [vmem:[%s1228_s4 + $0x30] sm:$0xff] (!%p729_p6), %v1113_v34  ;;  %658 = vst [vmem:[%s1228_s4 + $0x38] sm:$0xff] (!%p729_p6), %v576_v38 }
 0x22c   : > { %659 = vst [vmem:[%s1228_s4 + $0x40] sm:$0xff] (!%p729_p6), %v581_v44  ;;  %660 = vst [vmem:[%s1228_s4 + $0x48] sm:$0xff] (!%p729_p6), %v584_v48 }
 0x22d   : > { %661 = vst [vmem:[%s1228_s4 + $0x50] sm:$0xff] (!%p729_p6), %v589_v42  ;;  %662 = vst [vmem:[%s1228_s4 + $0x58] sm:$0xff] (!%p729_p6), %v592_v46 }
 0x22e   : > { %663 = vst [vmem:[%s1228_s4 + $0x60] sm:$0xff] (!%p729_p6), %v597_v52  ;;  %664 = vst [vmem:[%s1228_s4 + $0x68] sm:$0xff] (!%p729_p6), %v600_v56 }
 0x22f   : > { %665 = vst [vmem:[%s1228_s4 + $0x70] sm:$0xff] (!%p729_p6), %v605_v50  ;;  %666 = vst [vmem:[%s1228_s4 + $0x78] sm:$0xff] (!%p729_p6), %v608_v54 }
 0x230 PF: > { %s14_s15 = sadd.s32 1, %s898_s15  }
 0x231   : > { %p11_p7 = scmp.ge.s32.totalorder %s14_s15, 5  }
 0x233   :  { %13 = sbr.rel (!%p11_p7) target bundleno = 1 (0x1), region = 77 }

</bundles_post_ra>
